<compile_context>
chip_gen: v5e
topology: v5e:2x2
jax: 0.10.0
libtpu: 0.0.40
codegen_flags: <defaults>
</compile_context>

<pallas_src>
import functools

import jax
import jax.numpy as jnp
from jax.experimental import pallas as pl
from jax.experimental.pallas import tpu as pltpu


def _round_up(x: int, m: int) -> int:
    return (x + m - 1) // m * m


def _vmem_budget_and_limit():
    """Returns (tile-footprint budget, scoped VMEM limit) in bytes, per chip."""
    try:
        cap = int(pltpu.get_tpu_info().vmem_capacity_bytes)
    except Exception:
        cap = 64 * 1024 * 1024  # conservative fallback (v7x per-TC physical)
    limit = min(cap // 2, 64 * 1024 * 1024)
    budget = (limit * 3) // 4
    return budget, limit


# -----------------------------------------------------------------------------
# Kernels
# -----------------------------------------------------------------------------
def _linear_single_pass_kernel(x_ref, w_ref, b_ref, o_ref):
    """One (tm, tn) output tile; full-K contraction in a single MXU pass."""
    x = x_ref[...].astype(jnp.bfloat16)  # free VPU cast under the MXU/DMA
    acc = jnp.dot(x, w_ref[...], preferred_element_type=jnp.float32)
    o_ref[...] = (acc + b_ref[...].astype(jnp.float32)).astype(o_ref.dtype)


def _linear_ktiled_kernel(x_ref, w_ref, b_ref, o_ref):
    """Fallback for very large K: accumulate directly into the f32 output."""
    k = pl.program_id(2)
    x = x_ref[...].astype(jnp.bfloat16)

    @pl.when(k == 0)
    def _init():
        o_ref[...] = jnp.broadcast_to(b_ref[...].astype(jnp.float32), o_ref.shape)

    o_ref[...] += jnp.dot(x, w_ref[...], preferred_element_type=jnp.float32)


# -----------------------------------------------------------------------------
# Wrapper
# -----------------------------------------------------------------------------
@functools.partial(jax.jit, static_argnames=("out_dim",))
def linear_pallas(x: jax.Array, w: jax.Array, b: jax.Array, *, out_dim: int):
    """y = x @ w + b with x:(B, K) float, w:(K, Np) bf16, b:(1, Np) f32."""
    B, K = x.shape
    Kw, Np = w.shape
    if K != Kw:
        raise ValueError(f"Input feature dim {K} != weight input dim {Kw}.")
    if b.shape != (1, Np):
        raise ValueError(f"Bias shape {b.shape} != (1, {Np}).")

    # Lane-dense output columns (already true for init-padded params).
    if Np % 128 != 0:
        np_p = _round_up(Np, 128)
        w = jnp.pad(w, ((0, 0), (0, np_p - Np)))
        b = jnp.pad(b, ((0, 0), (0, np_p - Np)))
        Np = np_p

    budget, vmem_limit = _vmem_budget_and_limit()
    x_bytes = x.dtype.itemsize
    w_bytes = w.dtype.itemsize
    b_bytes = b.dtype.itemsize

    # ---- tile selection ------------------------------------------------------
    tm = min(512, _round_up(B, 8))          # big M tile => fewer W re-streams
    tn = 128                                # largest 128-multiple dividing Np
    for cand in (512, 256, 128):
        if Np % cand == 0:
            tn = cand
            break
    # v7x has 2 TensorCores: expose >= 2 blocks along the 'parallel' axes.
    if (_round_up(B, tm) // tm) * (Np // tn) < 2 and tn >= 256:
        tn //= 2

    def footprint(tm_, tk_, tn_):
        # double-buffered inputs + double-buffered f32 output + bias
        return (2 * (tm_ * tk_ * x_bytes + tk_ * tn_ * w_bytes)
                + 2 * tm_ * tn_ * 4 + 2 * tn_ * b_bytes)

    # Prefer a single full-K pass (no reduction axis, no accumulator).
    single_k = False
    for tm_cand in [tm] + [c for c in (256, 128, 64) if c < tm]:
        if footprint(tm_cand, K, tn) <= budget:
            tm, single_k = tm_cand, True
            break

    if single_k:
        Bp = _round_up(B, tm)
        m_blocks, n_blocks = Bp // tm, Np // tn
        if Bp != B:
            x = jnp.pad(x, ((0, Bp - B), (0, 0)))
        bytes_accessed = (x.size * x_bytes * n_blocks
                          + w.size * w_bytes * m_blocks
                          + b.size * b_bytes * m_blocks
                          + Bp * Np * 4)
        out = pl.pallas_call(
            _linear_single_pass_kernel,
            out_shape=jax.ShapeDtypeStruct((Bp, Np), jnp.float32),
            grid_spec=pltpu.PrefetchScalarGridSpec(
                num_scalar_prefetch=0,
                grid=(m_blocks, n_blocks),
                in_specs=[
                    pl.BlockSpec((tm, K), lambda i, j: (i, 0)),
                    pl.BlockSpec((K, tn), lambda i, j: (0, j)),
                    pl.BlockSpec((1, tn), lambda i, j: (0, j)),
                ],
                out_specs=pl.BlockSpec((tm, tn), lambda i, j: (i, j)),
            ),
            compiler_params=pltpu.CompilerParams(
                dimension_semantics=("parallel", "parallel"),
                vmem_limit_bytes=vmem_limit,
            ),
            cost_estimate=pl.CostEstimate(
                flops=2 * Bp * K * Np,
                transcendentals=0,
                bytes_accessed=bytes_accessed,
            ),
        )(x, w, b)
        return out[:B, :out_dim]

    # ---- fallback: K too large for one VMEM-resident pass -> tile K ----------
    tm = min(256, _round_up(B, 8))
    Bp = _round_up(B, tm)
    m_blocks, n_blocks = Bp // tm, Np // tn
    tk = 128
    for cand in (2048, 1024, 512, 256, 128):
        if footprint(tm, cand, tn) <= budget:
            tk = cand
            break
    Kp = _round_up(K, tk)
    if (Bp, Kp) != (B, K):
        x = jnp.pad(x, ((0, Bp - B), (0, Kp - K)))
    if Kp != K:
        w = jnp.pad(w, ((0, Kp - K), (0, 0)))
    k_blocks = Kp // tk
    bytes_accessed = (Bp * Kp * x_bytes * n_blocks
                      + Kp * Np * w_bytes * m_blocks
                      + b.size * b_bytes * m_blocks
                      + Bp * Np * 4)
    out = pl.pallas_call(
        _linear_ktiled_kernel,
        out_shape=jax.ShapeDtypeStruct((Bp, Np), jnp.float32),
        grid_spec=pltpu.PrefetchScalarGridSpec(
            num_scalar_prefetch=0,
            grid=(m_blocks, n_blocks, k_blocks),
            in_specs=[
                pl.BlockSpec((tm, tk), lambda i, j, k: (i, k)),
                pl.BlockSpec((tk, tn), lambda i, j, k: (k, j)),
                pl.BlockSpec((1, tn), lambda i, j, k: (0, j)),
            ],
            out_specs=pl.BlockSpec((tm, tn), lambda i, j, k: (i, j)),
        ),
        compiler_params=pltpu.CompilerParams(
            dimension_semantics=("parallel", "parallel", "arbitrary"),
            vmem_limit_bytes=vmem_limit,
        ),
        cost_estimate=pl.CostEstimate(
            flops=2 * Bp * Kp * Np,
            transcendentals=0,
            bytes_accessed=bytes_accessed,
        ),
    )(x, w, b)
    return out[:B, :out_dim]


# -----------------------------------------------------------------------------
# Module port
# -----------------------------------------------------------------------------
class ProteinEncoderPallas:
    """JAX/Pallas port of ProteinEncoder (forward only)."""

    def __init__(
        self,
        input_dim,
        output_dim,
        encoding_type="pretrained_embeddings",
        key=jax.random.PRNGKey(0),
        param_dtype=jnp.bfloat16,
    ):
        self.encoding_type = encoding_type
        self.output_dim = output_dim
        self.param_dtype = param_dtype

        if encoding_type == "pretrained_embeddings":
            if not isinstance(input_dim, int):
                raise ValueError(
                    "For 'pretrained_embeddings', input_dim must be an int."
                )
            self.input_dim = input_dim
            flat_in = input_dim
        elif encoding_type == "onehot":
            if not (isinstance(input_dim, tuple) and len(input_dim) == 2):
                raise ValueError(
                    "For 'onehot', input_dim must be (seq_len, alphabet_size)."
                )
            self.input_dim = input_dim
            flat_in = input_dim[0] * input_dim[1]
        else:
            raise ValueError(f"Unsupported protein encoding type: {encoding_type}")

        self.flat_in = flat_in

        # Deterministic init matching nn.Linear's U(-1/sqrt(fan_in), 1/sqrt(fan_in)),
        # stored pre-transposed as (in_features, out_features).
        kw, kb = jax.random.split(key)
        bound = 1.0 / (flat_in ** 0.5)
        w = jax.random.uniform(kw, (flat_in, output_dim), jnp.float32, -bound, bound)
        b = jax.random.uniform(kb, (1, output_dim), jnp.float32, -bound, bound)

        # Pad ONLY output columns to a multiple of 128 (lane-dense stores).
        # K stays exact: the kernel's full-K block needs no K padding, so x is
        # never re-materialized per call.  Padded columns are zero and sliced
        # off after the kernel, so they never leak into the result.
        dout_p = _round_up(output_dim, 128)
        self.weight = jnp.pad(w, ((0, 0), (0, dout_p - output_dim))).astype(
            param_dtype
        )
        self.bias = jnp.pad(b, ((0, 0), (0, dout_p - output_dim)))  # keep f32

    def __call__(self, sequence_data: jax.Array) -> jax.Array:
        if self.encoding_type == "onehot":
            # nn.Flatten(): (B, seq_len, alphabet) -> (B, seq_len * alphabet)
            x = sequence_data.reshape(sequence_data.shape[0], -1)
        else:
            x = sequence_data
        # No dtype cast here: x streams in its input dtype and is cast to bf16
        # inside the kernel (avoids an extra HBM round trip over x).
        out = linear_pallas(x, self.weight, self.bias, out_dim=self.output_dim)
        assert out.shape == (sequence_data.shape[0], self.output_dim)
        return out


if __name__ == "__main__":
    key = jax.random.PRNGKey(0)
    k_in1, k_in2, k_p1, k_p2 = jax.random.split(key, 4)

    # --- 'pretrained_embeddings' path: x (B=2, D_in=32) -> (2, 16) ------------
    B, D_in, D_out = 2, 32, 16
    x_emb = jax.random.normal(k_in1, (B, D_in), jnp.float32)
    enc_emb = ProteinEncoderPallas(
        D_in, D_out, encoding_type="pretrained_embeddings", key=k_p1
    )
    y_emb = jax.block_until_ready(enc_emb(x_emb))

    # Reference (same bf16-rounded operands, f32 accumulate).
    w_log = enc_emb.weight[:D_in, :D_out].astype(jnp.float32)
    b_log = enc_emb.bias[:, :D_out]
    x_bf = x_emb.astype(jnp.bfloat16).astype(jnp.float32)
    ref_emb = x_bf @ w_log + b_log
    assert y_emb.shape == (B, D_out)
    assert jnp.allclose(y_emb, ref_emb, atol=1e-2, rtol=1e-2)

    # --- 'onehot' path: x (B=2, seq_len=8, alphabet=4) -> (2, 16) -------------
    seq_len, alphabet = 8, 4
    ids = jax.random.randint(k_in2, (B, seq_len), 0, alphabet)
    x_onehot = jax.nn.one_hot(ids, alphabet, dtype=jnp.float32)
    enc_oh = ProteinEncoderPallas(
        (seq_len, alphabet), D_out, encoding_type="onehot", key=k_p2
    )
    y_oh = jax.block_until_ready(enc_oh(x_onehot))

    flat_in = seq_len * alphabet
    w_log_oh = enc_oh.weight[:flat_in, :D_out].astype(jnp.float32)
    b_log_oh = enc_oh.bias[:, :D_out]
    ref_oh = x_onehot.reshape(B, -1) @ w_log_oh + b_log_oh
    assert y_oh.shape == (B, D_out)
    assert jnp.allclose(y_oh, ref_oh, atol=1e-2, rtol=1e-2)

    print("KERNEL_OK")
</pallas_src>

<mosaic_0001>
module attributes {stable_mosaic.version = 11 : i64} {
  func.func @_linear_single_pass_kernel(%arg0: i32, %arg1: i32, %arg2: memref<8x32xf32, #tpu.memory_space<vmem>>, %arg3: memref<32x128xbf16, #tpu.memory_space<vmem>>, %arg4: memref<1x128xf32, #tpu.memory_space<vmem>>, %arg5: memref<8x128xf32, #tpu.memory_space<vmem>>) attributes {dimension_semantics = [#tpu.dimension_semantics<parallel>, #tpu.dimension_semantics<parallel>], iteration_bounds = array<i64: 1, 1>, scalar_prefetch = 0 : i64, scratch_operands = 0 : i64, tpu.core_type = #tpu.core_type<tc>, window_params = [{transform_indices = @transform_0, window_bounds = array<i64: 8, 32>}, {transform_indices = @transform_1, window_bounds = array<i64: 32, 128>}, {transform_indices = @transform_2, window_bounds = array<i64: 1, 128>}, {transform_indices = @transform_3, window_bounds = array<i64: 8, 128>}]} {
    %c0 = arith.constant 0 : index
    %c0_0 = arith.constant 0 : index
    %0 = vector.load %arg2[%c0, %c0_0] : memref<8x32xf32, #tpu.memory_space<vmem>>, vector<8x32xf32>
    %1 = arith.truncf %0 : vector<8x32xf32> to vector<8x32xbf16>
    %c0_1 = arith.constant 0 : index
    %c0_2 = arith.constant 0 : index
    %2 = vector.load %arg3[%c0_1, %c0_2] : memref<32x128xbf16, #tpu.memory_space<vmem>>, vector<32x128xbf16>
    %cst = arith.constant dense<0.000000e+00> : vector<8x128xf32>
    %3 = tpu.matmul %1, %2, %cst {dimension_numbers = #tpu.dot_dimension_numbers<[1], [0], [0], [1], [0, 0, 1, 1], [], []>} : vector<8x32xbf16>, vector<32x128xbf16>, vector<8x128xf32> -> vector<8x128xf32>
    %c0_3 = arith.constant 0 : index
    %c0_4 = arith.constant 0 : index
    %4 = vector.load %arg4[%c0_3, %c0_4] : memref<1x128xf32, #tpu.memory_space<vmem>>, vector<1x128xf32>
    %5 = vector.broadcast %4 : vector<1x128xf32> to vector<8x128xf32>
    %6 = arith.addf %3, %5 : vector<8x128xf32>
    %c0_5 = arith.constant 0 : index
    %c0_6 = arith.constant 0 : index
    %7 = vector.load %arg5[%c0_5, %c0_6] : memref<8x128xf32, #tpu.memory_space<vmem>>, vector<8x128xf32>
    tpu.vector_store %arg5[%c0_5, %c0_6], %6 {strides = array<i32>} : memref<8x128xf32, #tpu.memory_space<vmem>>, vector<8x128xf32>,
    return
  }
  func.func @transform_0(%arg0: i32, %arg1: i32) -> (i32, i32) {
    %c0_i32 = arith.constant 0 : i32
    %c0_i32_0 = arith.constant 0 : i32
    return %arg0, %c0_i32 : i32, i32
  }
  func.func @transform_1(%arg0: i32, %arg1: i32) -> (i32, i32) {
    %c0_i32 = arith.constant 0 : i32
    %c0_i32_0 = arith.constant 0 : i32
    return %c0_i32, %arg1 : i32, i32
  }
  func.func @transform_2(%arg0: i32, %arg1: i32) -> (i32, i32) {
    %c0_i32 = arith.constant 0 : i32
    %c0_i32_0 = arith.constant 0 : i32
    return %c0_i32, %arg1 : i32, i32
  }
  func.func @transform_3(%arg0: i32, %arg1: i32) -> (i32, i32) {
    %c0_i32 = arith.constant 0 : i32
    return %arg0, %arg1 : i32, i32
  }
}

</mosaic_0001>

<bundles_post_ra>
// kernel: linear_pallas.1
= control target key start
LH: loop header
LB: loop body
LE: loop exit
PB: predicated region body
PF: predicated region fallthrough
CT: control target
= control target key end

     0   :  { %8 = vsyncpa [#allocation3], 0  ;;  %s117_s15 = smov [#allocation2]   ;;  %s118_s17 = smov 64   ;;  %s152_s0 = inlined_call_operand.vmem [shape: f32[8,32], index: 0, kind: input, shape index: {}]   ;;  %s153_s1 = inlined_call_operand.hbm [shape: bf16[32,128], index: 1, kind: input, shape index: {}]   ;;  %s154_s2 = inlined_call_operand.vmem [shape: f32[1,128], index: 2, kind: input, shape index: {}]   ;;  %s155_s3 = inlined_call_operand.vmem [shape: f32[8,128], index: 3, kind: output, shape index: {}]  }
   0x1   :  { %s15_s14 = sshll.u32 %s153_s1, 4  ;;  %s17_s16 = sshll.u32 %s117_s15, 4  ;;  %s16_s14 = int_to_ptr.hbm [resolvable:$true] %s15_s14  ;;  %s18_s16 = int_to_ptr.vmem [resolvable:$true] %s17_s16 }
   0x2   :  { %s119_s18 = smov 4  }
   0x3   :  { %23 = dma.hbm_to_vmem [thread:$0]  %s16_s14, 256, %s18_s16, [#allocation3], %s118_s17, %s118_s17, %s119_s18  }
   0x4   :  { %115 = dma.done.wait [#allocation3], 256  }
   0x5   :  { %116 = vsyncadd [#allocation3], 4294967040  ;;  %v86_v0 = vld [vmem:[#allocation2 + $0x8] sm:$0xff]  ;;  %v85_v1 = vld [vmem:[#allocation2] sm:$0xff]  ;;  %vm53_vm0 = vcmask 261120  }
   0x6   :  { %63 = vmatpush.bf16.msra.mxu0 %v86_v0  ;;  %v31_v2 = vld [vmem:[%s152_s0] sm:$0xff] }
   0x7   :  { %v32_v3 = vpack.c.bf16 %v31_v2, %v31_v2  ;;  %v90_v4 = vld [vmem:[%s154_s2] ss:$0 sm:$0xff] }
   0xa   :  { %64 = vmatpush.bf16.msra.mxu0 %v85_v1 }
   0xd   :  { %84 = vmatmul.msk.bf16.vlgmr.msra.gmra.mxu0 %vm53_vm0, %v32_v3 }
  0x8a   :  { %v66_v5 = vpop.f32.mrf.mxu0 }
  0x8b   :  { %v67_v6 = vadd.f32 %v90_v4, %v66_v5 }
  0x8d   :  { %70 = vst [vmem:[%s155_s3] sm:$0xff] %v67_v6 }
  0x92   :  { %v68_v7 = vpop.f32.mrf.mxu0 }
  0x93   :  { %75 = vsyncpa [#allocation3], 1 }

</bundles_post_ra>
